<compile_context>
chip_gen: v5e
topology: v5e:2x2
jax: 0.10.0
libtpu: 0.0.40
codegen_flags: <defaults>
</compile_context>

<pallas_src>
import math

import jax
import jax.numpy as jnp
from jax.experimental import pallas as pl
from jax.experimental.pallas import tpu as pltpu


LANE = 128      # TPU lane width (last-dim store granularity)
ROW_GRAN = 16   # row-tile granularity (sublane-safe for both f32 and bf16)


def _round_up(x, m):
    return ((x + m - 1) // m) * m


def logreg_kernel(x_ref, w1_ref, b1_ref, w2_ref, b2_ref, o_ref):
    # fc1: [tm, ft_in] @ [ft_in, mid] with f32 accumulation on the MXU.
    h = jnp.dot(x_ref[...], w1_ref[...], preferred_element_type=jnp.float32)
    # Bias add + tanh in f32 (VPU/EUP work stays f32; safe on v5e even for bf16 inputs).
    h = jnp.tanh(h + b1_ref[...])
    # fc2: cast activations to the weight dtype for the MXU, accumulate in f32.
    out = jnp.dot(h.astype(w2_ref.dtype), w2_ref[...],
                  preferred_element_type=jnp.float32)
    out = out + b2_ref[...]
    # Lane-dense store into the [tile_m, C_pad] (C_pad % 128 == 0) output slab.
    o_ref[...] = out.astype(o_ref.dtype)


def _choose_tile_m(n_rows, bytes_per_row_in, bytes_per_row_out, vmem_budget_bytes):
    """Pick a batch tile: large enough to hide per-step overhead, small enough
    to fit the double-buffered VMEM budget, and leaving >= 2 grid steps when
    the batch allows it (so v7x megacore can shard the 'parallel' axis)."""
    per_row = 2 * bytes_per_row_in + 2 * bytes_per_row_out   # double-buffered in + out
    cap_by_vmem = max(vmem_budget_bytes // per_row, ROW_GRAN)
    tile = min(1024, cap_by_vmem)                            # measured sweet spot 512-2048
    if n_rows >= 2 * ROW_GRAN:                               # keep >= 2 grid steps (v7x: 2 TCs)
        tile = min(tile, _round_up(pl.cdiv(n_rows, 2), ROW_GRAN))
    tile = min(tile, _round_up(n_rows, ROW_GRAN))
    if tile >= 256:                                          # MXU-friendly granularity
        tile = (tile // 256) * 256
    else:
        tile = max((tile // ROW_GRAN) * ROW_GRAN, ROW_GRAN)
    return tile


def logreg_forward(x, w1, b1, w2, b2, *, compute_dtype=None, tile_m=None):
    """tanh(x @ w1 + b1) @ w2 + b2, returned in float32.

    x:  [N, ft_in];  w1: [ft_in, mid];  b1: [1, mid];  w2: [mid, C];  b2: [1, C]
    compute_dtype: optionally bf16 storage for x/w1/w2 (accumulation stays f32).
    """
    N, ft_in = x.shape
    mid = w1.shape[1]
    C = w2.shape[1]

    # Optional low-precision storage for the HBM-heavy operands; biases stay f32.
    if compute_dtype is not None:
        x = x.astype(compute_dtype)
        w1 = w1.astype(compute_dtype)
        w2 = w2.astype(compute_dtype)
    b1 = b1.astype(jnp.float32)
    b2 = b2.astype(jnp.float32)

    # Lane-dense output: pad the class dim (w2/b2 columns) to a multiple of 128
    # so the output store is an unmasked full-lane vst; slice back afterwards.
    C_pad = _round_up(C, LANE)
    if C_pad != C:
        w2 = jnp.pad(w2, ((0, 0), (0, C_pad - C)))
        b2 = jnp.pad(b2, ((0, 0), (0, C_pad - C)))

    x_bytes = x.dtype.itemsize
    if tile_m is None:
        tile_m = _choose_tile_m(
            N,
            bytes_per_row_in=ft_in * x_bytes,
            bytes_per_row_out=C_pad * 4,
            vmem_budget_bytes=32 * 1024 * 1024,   # conservative: fits v7x's 64 MiB VMEM
        )
    tile_m = max(ROW_GRAN, (tile_m // ROW_GRAN) * ROW_GRAN)

    # Pad the batch so every tile is full; padded rows are zeros and sliced off.
    N_pad = _round_up(N, tile_m)
    if N_pad != N:
        x = jnp.pad(x, ((0, N_pad - N), (0, 0)))
    grid = (N_pad // tile_m,)

    # Rough VMEM need: double-buffered x + out tiles plus resident params.
    resident = (w1.size + w2.size) * x_bytes + (b1.size + b2.size) * 4
    est_vmem = 2 * tile_m * ft_in * x_bytes + 2 * tile_m * C_pad * 4 + resident
    vmem_limit = int(min(max(2 * est_vmem, 32 * 1024 * 1024), 48 * 1024 * 1024))

    # Small resident operands: whole arrays placed in VMEM once (no per-step
    # double-buffering), leaving the VMEM budget to the batch tile.
    resident_spec = pl.BlockSpec(memory_space=pltpu.MemorySpace.VMEM)

    out = pl.pallas_call(
        logreg_kernel,
        out_shape=jax.ShapeDtypeStruct((N_pad, C_pad), jnp.float32),
        grid=grid,
        in_specs=[
            pl.BlockSpec((tile_m, ft_in), lambda i: (i, 0)),   # x: pipelined batch tiles
            resident_spec,                                     # w1 (resident)
            resident_spec,                                     # b1 (resident)
            resident_spec,                                     # w2 (padded to C_pad)
            resident_spec,                                     # b2 (padded to C_pad)
        ],
        out_specs=pl.BlockSpec((tile_m, C_pad), lambda i: (i, 0)),
        compiler_params=pltpu.CompilerParams(
            dimension_semantics=("parallel",),   # batch tiles shard across TCs on v7x
            vmem_limit_bytes=vmem_limit,
        ),
    )(x, w1, b1, w2, b2)

    return out[:N, :C]


def xavier_uniform(key, fan_in, fan_out, dtype=jnp.float32):
    # Matches torch.nn.init.xavier_uniform_ (gain=1.0); returned in [in, out] layout.
    limit = math.sqrt(6.0 / (fan_in + fan_out))
    return jax.random.uniform(key, (fan_in, fan_out), dtype, minval=-limit, maxval=limit)


if __name__ == "__main__":
    # Small, module-consistent shapes.
    batch = 8
    ft_in = 32
    mid = ft_in // 2          # int(ft_in / 2)
    nb_classes = 4

    key = jax.random.PRNGKey(0)
    kx, kw1, kw2, kx2 = jax.random.split(key, 4)

    x = jax.random.normal(kx, (batch, ft_in), jnp.float32)

    # Deterministic parameter init mirroring weights_init (xavier_uniform, zero bias).
    w1 = xavier_uniform(kw1, ft_in, mid)            # [ft_in, mid]
    b1 = jnp.zeros((1, mid), jnp.float32)
    w2 = xavier_uniform(kw2, mid, nb_classes)       # [mid, nb_classes]
    b2 = jnp.zeros((1, nb_classes), jnp.float32)

    # f32 path: tight check against the plain-JAX reference.
    out = jax.block_until_ready(logreg_forward(x, w1, b1, w2, b2))
    ref = jnp.tanh(x @ w1 + b1) @ w2 + b2
    assert out.shape == (batch, nb_classes)
    assert jnp.allclose(out, ref, atol=1e-5, rtol=1e-5), "f32 mismatch vs reference"

    # Second check: non-divisible batch (pads to full tiles, multi-step grid)
    # plus the bf16 storage path (f32 accumulation/tanh inside the kernel).
    x2 = jax.random.normal(kx2, (300, ft_in), jnp.float32)
    out2 = jax.block_until_ready(
        logreg_forward(x2, w1, b1, w2, b2, compute_dtype=jnp.bfloat16))
    ref2 = jnp.tanh(x2 @ w1 + b1) @ w2 + b2
    assert out2.shape == (300, nb_classes)
    assert jnp.allclose(out2, ref2, atol=1e-1, rtol=1e-1), "bf16 mismatch vs reference"

    print("KERNEL_OK")
</pallas_src>

<mosaic_0001>
module attributes {stable_mosaic.version = 11 : i64} {
  func.func @logreg_kernel(%arg0: i32, %arg1: memref<16x32xf32, #tpu.memory_space<vmem>>, %arg2: memref<32x16xf32, #tpu.memory_space<vmem>>, %arg3: memref<1x16xf32, #tpu.memory_space<vmem>>, %arg4: memref<16x128xf32, #tpu.memory_space<vmem>>, %arg5: memref<1x128xf32, #tpu.memory_space<vmem>>, %arg6: memref<16x128xf32, #tpu.memory_space<vmem>>) attributes {dimension_semantics = [#tpu.dimension_semantics<parallel>], iteration_bounds = array<i64: 1>, scalar_prefetch = 0 : i64, scratch_operands = 0 : i64, tpu.core_type = #tpu.core_type<tc>, window_params = [{transform_indices = @transform_0, window_bounds = array<i64: 16, 32>}, {pipeline_mode = #tpu.pipeline_mode<synchronous>, transform_indices = @transform_1, window_bounds = array<i64: 32, 16>}, {pipeline_mode = #tpu.pipeline_mode<synchronous>, transform_indices = @transform_2, window_bounds = array<i64: 1, 16>}, {pipeline_mode = #tpu.pipeline_mode<synchronous>, transform_indices = @transform_3, window_bounds = array<i64: 16, 128>}, {pipeline_mode = #tpu.pipeline_mode<synchronous>, transform_indices = @transform_4, window_bounds = array<i64: 1, 128>}, {transform_indices = @transform_5, window_bounds = array<i64: 16, 128>}]} {
    %c0 = arith.constant 0 : index
    %c0_0 = arith.constant 0 : index
    %0 = vector.load %arg1[%c0, %c0_0] : memref<16x32xf32, #tpu.memory_space<vmem>>, vector<16x32xf32>
    %c0_1 = arith.constant 0 : index
    %c0_2 = arith.constant 0 : index
    %1 = vector.load %arg2[%c0_1, %c0_2] : memref<32x16xf32, #tpu.memory_space<vmem>>, vector<32x16xf32>
    %cst = arith.constant dense<0.000000e+00> : vector<16x16xf32>
    %2 = tpu.matmul %0, %1, %cst {dimension_numbers = #tpu.dot_dimension_numbers<[1], [0], [0], [1], [0, 0, 1, 1], [], []>} : vector<16x32xf32>, vector<32x16xf32>, vector<16x16xf32> -> vector<16x16xf32>
    %c0_3 = arith.constant 0 : index
    %c0_4 = arith.constant 0 : index
    %3 = vector.load %arg3[%c0_3, %c0_4] : memref<1x16xf32, #tpu.memory_space<vmem>>, vector<1x16xf32>
    %4 = vector.broadcast %3 : vector<1x16xf32> to vector<16x16xf32>
    %5 = arith.addf %2, %4 : vector<16x16xf32>
    %6 = math.tanh %5 : vector<16x16xf32>
    %c0_5 = arith.constant 0 : index
    %c0_6 = arith.constant 0 : index
    %7 = vector.load %arg4[%c0_5, %c0_6] : memref<16x128xf32, #tpu.memory_space<vmem>>, vector<16x128xf32>
    %cst_7 = arith.constant dense<0.000000e+00> : vector<16x128xf32>
    %8 = tpu.matmul %6, %7, %cst_7 {dimension_numbers = #tpu.dot_dimension_numbers<[1], [0], [0], [1], [0, 0, 1, 1], [], []>} : vector<16x16xf32>, vector<16x128xf32>, vector<16x128xf32> -> vector<16x128xf32>
    %c0_8 = arith.constant 0 : index
    %c0_9 = arith.constant 0 : index
    %9 = vector.load %arg5[%c0_8, %c0_9] : memref<1x128xf32, #tpu.memory_space<vmem>>, vector<1x128xf32>
    %10 = vector.broadcast %9 : vector<1x128xf32> to vector<16x128xf32>
    %11 = arith.addf %8, %10 : vector<16x128xf32>
    %c0_10 = arith.constant 0 : index
    %c0_11 = arith.constant 0 : index
    %12 = vector.load %arg6[%c0_10, %c0_11] : memref<16x128xf32, #tpu.memory_space<vmem>>, vector<16x128xf32>
    tpu.vector_store %arg6[%c0_10, %c0_11], %11 {strides = array<i32>} : memref<16x128xf32, #tpu.memory_space<vmem>>, vector<16x128xf32>,
    return
  }
  func.func @transform_0(%arg0: i32) -> (i32, i32) {
    %c0_i32 = arith.constant 0 : i32
    %c0_i32_0 = arith.constant 0 : i32
    return %arg0, %c0_i32 : i32, i32
  }
  func.func @transform_1(%arg0: i32) -> (i32, i32) {
    %c0_i32 = arith.constant 0 : i32
    %c0_i32_0 = arith.constant 0 : i32
    %c0_i32_1 = arith.constant 0 : i32
    return %c0_i32, %c0_i32_0 : i32, i32
  }
  func.func @transform_2(%arg0: i32) -> (i32, i32) {
    %c0_i32 = arith.constant 0 : i32
    %c0_i32_0 = arith.constant 0 : i32
    %c0_i32_1 = arith.constant 0 : i32
    return %c0_i32, %c0_i32_0 : i32, i32
  }
  func.func @transform_3(%arg0: i32) -> (i32, i32) {
    %c0_i32 = arith.constant 0 : i32
    %c0_i32_0 = arith.constant 0 : i32
    %c0_i32_1 = arith.constant 0 : i32
    return %c0_i32, %c0_i32_0 : i32, i32
  }
  func.func @transform_4(%arg0: i32) -> (i32, i32) {
    %c0_i32 = arith.constant 0 : i32
    %c0_i32_0 = arith.constant 0 : i32
    %c0_i32_1 = arith.constant 0 : i32
    return %c0_i32, %c0_i32_0 : i32, i32
  }
  func.func @transform_5(%arg0: i32) -> (i32, i32) {
    %c0_i32 = arith.constant 0 : i32
    %c0_i32_0 = arith.constant 0 : i32
    return %arg0, %c0_i32 : i32, i32
  }
}

</mosaic_0001>

<bundles_post_ra>
// kernel: tpu_custom_call.1
= control target key start
LH: loop header
LB: loop body
LE: loop exit
PB: predicated region body
PF: predicated region fallthrough
CT: control target
= control target key end

     0   :  { %s230_s0 = inlined_call_operand.vmem [shape: f32[16,32], index: 0, kind: input, shape index: {}]   ;;  %s231_s1 = inlined_call_operand.vmem [shape: f32[32,16], index: 1, kind: input, shape index: {}]   ;;  %s232_s2 = inlined_call_operand.vmem [shape: f32[1,16], index: 2, kind: input, shape index: {}]   ;;  %s233_s3 = inlined_call_operand.vmem [shape: f32[16,128], index: 3, kind: input, shape index: {}]   ;;  %s234_s4 = inlined_call_operand.vmem [shape: f32[1,128], index: 4, kind: input, shape index: {}]   ;;  %s235_s5 = inlined_call_operand.hbm [shape: f32[16,128], index: 5, kind: output, shape index: {}]  }
   0x1   :  { %v26_v0 = vld [vmem:[%s231_s1 + $0x18] sm:$0xff]  ;;  %v25_v1 = vld [vmem:[%s231_s1 + $0x10] sm:$0xff]  ;;  %v24_v2 = vld [vmem:[%s231_s1 + $0x8] sm:$0xff] }
   0x2   :  { %123 = vmatpush.msra.mxu2 %v26_v0  ;;  %50 = vmatpush.msra.mxu0 %v26_v0 }
   0x4   :  { %124 = vmatpush.msra.mxu2 %v25_v1  ;;  %51 = vmatpush.msra.mxu0 %v25_v1 }
   0x5   :  { %10 = vsyncpa [#allocation3], 0  ;;  %v23_v3 = vld [vmem:[%s231_s1] sm:$0xff]  ;;  %v22_v4 = vld [vmem:[%s230_s0 + $0x8] sm:$0xff]  ;;  %vm31_vm0 = vcmask 261120   ;;  %vm69_vm1 = vcmask 130048  }
   0x6   :  { %125 = vmatpush.msra.mxu2 %v24_v2  ;;  %52 = vmatpush.msra.mxu0 %v24_v2  ;;  %v21_v5 = vld [vmem:[%s230_s0] sm:$0xff]  ;;  %v64_v6 = vld [vmem:[%s233_s3 + $0x8] sm:$0xff]  ;;  %s164_s10 = smov [#allocation2]   ;;  %s107_s13 = sshll.u32 %s235_s5, 4  ;;  %s108_s13 = int_to_ptr.hbm [resolvable:$true] %s107_s13 }
   0x7   :  { %v63_v7 = vld [vmem:[%s233_s3] sm:$0xff]  ;;  %127 = vmatpush.msra.mxu3 %v64_v6  ;;  %90 = vmatpush.msra.mxu1 %v64_v6  ;;  %s165_s14 = smov 128   ;;  %s166_s15 = smov 8  }
   0x8   :  { %126 = vmatpush.msra.mxu2 %v23_v3  ;;  %53 = vmatpush.msra.mxu0 %v23_v3  ;;  %v132_v8 = vld [vmem:[%s232_s2] ss:$0 sm:$0xff]  ;;  %s105_s2 = sshll.u32 %s164_s10, 4  ;;  %s106_s2 = int_to_ptr.vmem [resolvable:$true] %s105_s2 }
   0x9   :  { %120 = vmatmul.msk.f32.vlgmr.msra.gmra.mxu2 %vm31_vm0, %v22_v4  ;;  %119 = vmatmul.msk.f32.vlgmr.msra.gmra.mxu0 %vm31_vm0, %v21_v5  ;;  %v133_v15 = vld [vmem:[%s234_s4] ss:$0 sm:$0xff] }
   0xa   :  { %128 = vmatpush.msra.mxu3 %v63_v7  ;;  %91 = vmatpush.msra.mxu1 %v63_v7 }
  0x86   :  { %v55_v9 = vpop.f32.mrf.mxu0 }
  0x87   :  { %v56_v10 = vadd.f32 %v132_v8, %v55_v9 }
  0x89   :  { %134 = vtanh.f32 %v56_v10 }
  0x8c   :  { %v58_v11 = vpop.f32.mrf.mxu2 }
  0x8d   :  { %v59_v12 = vadd.f32 %v132_v8, %v58_v11 }
  0x8f   :  { %v135_v13 = vpop.eup %134  ;;  %136 = vtanh.f32 %v59_v12 }
  0x90   :  { %121 = vmatmul.msk.f32.vlgmr.msra.gmra.mxu1 %vm69_vm1, %v135_v13 }
  0x95   :  { %v137_v14 = vpop.eup %136 }
  0x96   :  { %122 = vmatmul.msk.f32.vlgmr.msra.gmra.mxu3 %vm69_vm1, %v137_v14 }
 0x10d   :  { %v93_v16 = vpop.f32.mrf.mxu1 }
 0x10e   :  { %v94_v17 = vadd.f32 %v133_v15, %v93_v16 }
 0x110   :  { %99 = vst [vmem:[#allocation2] sm:$0xff] %v94_v17 }
 0x119   :  { %v96_v18 = vpop.f32.mrf.mxu3 }
 0x11a   :  { %v97_v19 = vadd.f32 %v133_v15, %v96_v18 }
 0x11c   :  { %100 = vst [vmem:[#allocation2 + $0x8] sm:$0xff] %v97_v19 }
 0x11d   :  { %113 = dma.vmem_to_hbm [thread:$0]  %s106_s2, 256, %s108_s13, [#allocation3], %s165_s14, %s165_s14, %s166_s15  }
 0x11e   :  { %162 = dma.done.wait [#allocation3], 256  }
 0x11f   :  { %163 = vsyncadd [#allocation3], 4294967040 }
 0x120   :  { %118 = vsyncpa [#allocation3], 1 }

</bundles_post_ra>
